<compile_context>
chip_gen: v7x
topology: tpu7x:2x2x1
jax: 0.10.0
libtpu: 0.0.40
codegen_flags: <defaults>
</compile_context>

<pallas_src>
import jax
import jax.numpy as jnp
import numpy as np
from jax.experimental import pallas as pl
from jax.experimental.pallas import tpu as pltpu

LANE = 128      # vreg lane width
SUBLANE = 8     # vreg sublane granule (f32)


def _round_up(v, m):
    return (v + m - 1) // m * m


# ------------------------------ Fused MLP kernel ------------------------------

def mlp_kernel(x_ref, w1_ref, b1_ref, w2_ref, b2_ref, w3_ref, b3_ref, o_ref):
    """One batch tile per grid step: fc1 -> ReLU -> fc2 -> ReLU -> fc3 -> softmax.

    w3/b3/o are pre-padded to a lane-dense class dim (multiple of 128); padded
    logits are -1e30, so exp() underflows to exactly 0 and the softmax over the
    padded axis equals the softmax over the real classes.
    """
    x = x_ref[...]                                                    # (Bb, D)
    # fc1 + ReLU
    h = jnp.dot(x, w1_ref[...], preferred_element_type=jnp.float32) + b1_ref[...]
    h = jnp.maximum(h, 0.0)                                           # (Bb, H1)
    # fc2 + ReLU
    h = jnp.dot(h, w2_ref[...], preferred_element_type=jnp.float32) + b2_ref[...]
    h = jnp.maximum(h, 0.0)                                           # (Bb, H2)
    # fc3 (class dim padded to Opad lanes)
    z = jnp.dot(h, w3_ref[...], preferred_element_type=jnp.float32) + b3_ref[...]
    # Softmax over the (padded) class axis — exact normalization.
    z = z - jnp.max(z, axis=-1, keepdims=True)
    e = jnp.exp(z)
    denom = jnp.sum(e, axis=-1, keepdims=True)
    o_ref[...] = (e / denom).astype(o_ref.dtype)                      # (Bb, Opad)
    # TODO(synk): at scaled D/H, cast dot operands to bf16 (keep f32 accumulate)
    # and/or switch to a batch-on-lanes layout; both are no-ops at demo size.


# --------------------------------- Wrapper ------------------------------------

def _choose_batch_tile(B, batch_tile):
    """Multiple-of-8 batch tile; prefer an exact divisor of B (no X padding),
    capped at ~ceil(B/2) so the parallel grid has >=2 steps when B allows."""
    batch_tile = max(SUBLANE, _round_up(batch_tile, SUBLANE))
    b8 = _round_up(B, SUBLANE)
    half = max(SUBLANE, _round_up(-(-B // 2), SUBLANE))
    cap = min(batch_tile, half, b8)
    for bb in range(cap, SUBLANE - 1, -SUBLANE):
        if B % bb == 0:
            return bb          # exact divisor -> no wrapper-side pad of X
    return cap                 # fall back to padding the last tile


def nn_classification_forward(x, params, *, batch_tile=512):
    """x: (B, input_size) -> (B, out_size) softmax probabilities."""
    B, D = x.shape
    w1, b1 = params["w1"], params["b1"]
    w2, b2 = params["w2"], params["b2"]
    w3, b3 = params["w3"], params["b3"]
    H1, H2, O = w1.shape[1], w2.shape[1], w3.shape[1]

    # Lane-dense output: pad class dim up to a multiple of 128.
    Opad = _round_up(O, LANE)
    if Opad != O:
        w3 = jnp.pad(w3, ((0, 0), (0, Opad - O)))                     # zero columns
        b3 = jnp.pad(b3, ((0, 0), (0, Opad - O)), constant_values=-1e30)

    # Batch tiling (prefer no padding of X).
    Bb = _choose_batch_tile(B, batch_tile)
    Bpad = _round_up(B, Bb)
    if Bpad != B:
        x = jnp.pad(x, ((0, Bpad - B), (0, 0)))

    # Explicit VMEM budget: double-buffered x/out tiles, resident (double-
    # buffered, conservatively) weights/biases, live f32 intermediates.
    f32 = 4
    vmem_bytes = (
        2 * Bb * D * x.dtype.itemsize
        + 2 * Bb * Opad * x.dtype.itemsize
        + 2 * (D * H1 + H1 + H1 * H2 + H2 + H2 * Opad + Opad) * f32
        + Bb * (H1 + H2 + Opad) * f32
    )
    vmem_limit = int(min(max(2 * vmem_bytes, 16 << 20), 48 << 20))    # < v7x 64 MiB

    out = pl.pallas_call(
        mlp_kernel,
        out_shape=jax.ShapeDtypeStruct((Bpad, Opad), x.dtype),
        grid=(Bpad // Bb,),
        in_specs=[
            pl.BlockSpec((Bb, D), lambda i: (i, 0)),      # activations: tiled over batch
            pl.BlockSpec((D, H1), lambda i: (0, 0)),      # weights/biases: VMEM-resident
            pl.BlockSpec((1, H1), lambda i: (0, 0)),
            pl.BlockSpec((H1, H2), lambda i: (0, 0)),
            pl.BlockSpec((1, H2), lambda i: (0, 0)),
            pl.BlockSpec((H2, Opad), lambda i: (0, 0)),
            pl.BlockSpec((1, Opad), lambda i: (0, 0)),
        ],
        out_specs=pl.BlockSpec((Bb, Opad), lambda i: (i, 0)),         # lane-dense store
        compiler_params=pltpu.CompilerParams(
            dimension_semantics=("parallel",),            # shard batch tiles across v7x TCs
            vmem_limit_bytes=vmem_limit,
        ),
    )(x, w1, b1, w2, b2, w3, b3)
    return out[:B, :O]


# --------------------------- Deterministic parameters ---------------------------

def init_params(key, input_size, out_size):
    """nn.Linear-style init; weights stored as (in, out) so the kernel does x @ W."""
    def linear(kw, kb, fan_in, fan_out):
        bound = 1.0 / np.sqrt(fan_in)
        w = jax.random.uniform(kw, (fan_in, fan_out), jnp.float32, -bound, bound)
        b = jax.random.uniform(kb, (1, fan_out), jnp.float32, -bound, bound)
        return w, b

    k1, k2, k3, k4, k5, k6 = jax.random.split(key, 6)
    w1, b1 = linear(k1, k2, input_size, 400)
    w2, b2 = linear(k3, k4, 400, 100)
    w3, b3 = linear(k5, k6, 100, out_size)
    return {"w1": w1, "b1": b1, "w2": w2, "b2": b2, "w3": w3, "b3": b3}


# --------------------- Pure-JAX reference (PyTorch semantics) ---------------------

def ref_forward(x, p):
    hp = jax.lax.Precision.HIGHEST
    h = jax.nn.relu(jnp.dot(x, p["w1"], precision=hp) + p["b1"][0])
    h = jax.nn.relu(jnp.dot(h, p["w2"], precision=hp) + p["b2"][0])
    z = jnp.dot(h, p["w3"], precision=hp) + p["b3"][0]
    return jax.nn.softmax(z, axis=1)                      # nn.Softmax(dim=1)


if __name__ == "__main__":
    B, INPUT_SIZE, OUT_SIZE = 8, 16, 10

    key = jax.random.PRNGKey(0)
    key, kx = jax.random.split(key)
    x = jax.random.normal(kx, (B, INPUT_SIZE), jnp.float32)
    params = init_params(key, INPUT_SIZE, OUT_SIZE)

    out = jax.block_until_ready(nn_classification_forward(x, params))
    ref = ref_forward(x, params)
    np.testing.assert_allclose(np.asarray(out), np.asarray(ref), rtol=1e-2, atol=1e-3)
    # Exact in-kernel normalization: every row sums to 1 (up to f32 rounding).
    np.testing.assert_allclose(np.asarray(out).sum(axis=1), np.ones(B), rtol=1e-4, atol=1e-4)

    print("KERNEL_OK")
</pallas_src>

<mosaic_0001>
module attributes {stable_mosaic.version = 11 : i64} {
  func.func @mlp_kernel(%arg0: i32, %arg1: memref<8x16xf32, #tpu.memory_space<vmem>>, %arg2: memref<16x400xf32, #tpu.memory_space<vmem>>, %arg3: memref<1x400xf32, #tpu.memory_space<vmem>>, %arg4: memref<400x100xf32, #tpu.memory_space<vmem>>, %arg5: memref<1x100xf32, #tpu.memory_space<vmem>>, %arg6: memref<100x128xf32, #tpu.memory_space<vmem>>, %arg7: memref<1x128xf32, #tpu.memory_space<vmem>>, %arg8: memref<8x128xf32, #tpu.memory_space<vmem>>) attributes {dimension_semantics = [#tpu.dimension_semantics<parallel>], iteration_bounds = array<i64: 1>, scalar_prefetch = 0 : i64, scratch_operands = 0 : i64, tpu.core_type = #tpu.core_type<tc>, window_params = [{transform_indices = @transform_0, window_bounds = array<i64: 8, 16>}, {pipeline_mode = #tpu.pipeline_mode<synchronous>, transform_indices = @transform_1, window_bounds = array<i64: 16, 400>}, {pipeline_mode = #tpu.pipeline_mode<synchronous>, transform_indices = @transform_2, window_bounds = array<i64: 1, 400>}, {pipeline_mode = #tpu.pipeline_mode<synchronous>, transform_indices = @transform_3, window_bounds = array<i64: 400, 100>}, {pipeline_mode = #tpu.pipeline_mode<synchronous>, transform_indices = @transform_4, window_bounds = array<i64: 1, 100>}, {pipeline_mode = #tpu.pipeline_mode<synchronous>, transform_indices = @transform_5, window_bounds = array<i64: 100, 128>}, {pipeline_mode = #tpu.pipeline_mode<synchronous>, transform_indices = @transform_6, window_bounds = array<i64: 1, 128>}, {transform_indices = @transform_7, window_bounds = array<i64: 8, 128>}]} {
    %c0 = arith.constant 0 : index
    %c0_0 = arith.constant 0 : index
    %0 = vector.load %arg1[%c0, %c0_0] : memref<8x16xf32, #tpu.memory_space<vmem>>, vector<8x16xf32>
    %c0_1 = arith.constant 0 : index
    %c0_2 = arith.constant 0 : index
    %1 = vector.load %arg2[%c0_1, %c0_2] : memref<16x400xf32, #tpu.memory_space<vmem>>, vector<16x400xf32>
    %cst = arith.constant dense<0.000000e+00> : vector<8x400xf32>
    %2 = tpu.matmul %0, %1, %cst {dimension_numbers = #tpu.dot_dimension_numbers<[1], [0], [0], [1], [0, 0, 1, 1], [], []>} : vector<8x16xf32>, vector<16x400xf32>, vector<8x400xf32> -> vector<8x400xf32>
    %c0_3 = arith.constant 0 : index
    %c0_4 = arith.constant 0 : index
    %3 = vector.load %arg3[%c0_3, %c0_4] : memref<1x400xf32, #tpu.memory_space<vmem>>, vector<1x400xf32>
    %4 = vector.broadcast %3 : vector<1x400xf32> to vector<8x400xf32>
    %5 = arith.addf %2, %4 : vector<8x400xf32>
    %cst_5 = arith.constant 0.000000e+00 : f32
    %6 = vector.broadcast %cst_5 : f32 to vector<8x400xf32>
    %7 = arith.maximumf %5, %6 : vector<8x400xf32>
    %c0_6 = arith.constant 0 : index
    %c0_7 = arith.constant 0 : index
    %8 = vector.load %arg4[%c0_6, %c0_7] : memref<400x100xf32, #tpu.memory_space<vmem>>, vector<400x100xf32>
    %cst_8 = arith.constant dense<0.000000e+00> : vector<8x100xf32>
    %9 = tpu.matmul %7, %8, %cst_8 {dimension_numbers = #tpu.dot_dimension_numbers<[1], [0], [0], [1], [0, 0, 1, 1], [], []>} : vector<8x400xf32>, vector<400x100xf32>, vector<8x100xf32> -> vector<8x100xf32>
    %c0_9 = arith.constant 0 : index
    %c0_10 = arith.constant 0 : index
    %10 = vector.load %arg5[%c0_9, %c0_10] : memref<1x100xf32, #tpu.memory_space<vmem>>, vector<1x100xf32>
    %11 = vector.broadcast %10 : vector<1x100xf32> to vector<8x100xf32>
    %12 = arith.addf %9, %11 : vector<8x100xf32>
    %cst_11 = arith.constant 0.000000e+00 : f32
    %13 = vector.broadcast %cst_11 : f32 to vector<8x100xf32>
    %14 = arith.maximumf %12, %13 : vector<8x100xf32>
    %c0_12 = arith.constant 0 : index
    %c0_13 = arith.constant 0 : index
    %15 = vector.load %arg6[%c0_12, %c0_13] : memref<100x128xf32, #tpu.memory_space<vmem>>, vector<100x128xf32>
    %cst_14 = arith.constant dense<0.000000e+00> : vector<8x128xf32>
    %16 = tpu.matmul %14, %15, %cst_14 {dimension_numbers = #tpu.dot_dimension_numbers<[1], [0], [0], [1], [0, 0, 1, 1], [], []>} : vector<8x100xf32>, vector<100x128xf32>, vector<8x128xf32> -> vector<8x128xf32>
    %c0_15 = arith.constant 0 : index
    %c0_16 = arith.constant 0 : index
    %17 = vector.load %arg7[%c0_15, %c0_16] : memref<1x128xf32, #tpu.memory_space<vmem>>, vector<1x128xf32>
    %18 = vector.broadcast %17 : vector<1x128xf32> to vector<8x128xf32>
    %19 = arith.addf %16, %18 : vector<8x128xf32>
    %cst_17 = arith.constant dense<0xFF800000> : vector<8xf32>
    %20 = vector.multi_reduction <maximumf>, %19, %cst_17 [1] : vector<8x128xf32> to vector<8xf32>
    %21 = vector.shape_cast %20 : vector<8xf32> to vector<8x1xf32>
    %22 = vector.broadcast %21 : vector<8x1xf32> to vector<8x128xf32>
    %23 = arith.subf %19, %22 : vector<8x128xf32>
    %24 = math.exp %23 : vector<8x128xf32>
    %cst_18 = arith.constant dense<0.000000e+00> : vector<8xf32>
    %25 = vector.multi_reduction <add>, %24, %cst_18 [1] : vector<8x128xf32> to vector<8xf32>
    %26 = vector.shape_cast %25 : vector<8xf32> to vector<8x1xf32>
    %27 = vector.broadcast %26 : vector<8x1xf32> to vector<8x128xf32>
    %28 = arith.divf %24, %27 : vector<8x128xf32>
    %c0_19 = arith.constant 0 : index
    %c0_20 = arith.constant 0 : index
    %29 = vector.load %arg8[%c0_19, %c0_20] : memref<8x128xf32, #tpu.memory_space<vmem>>, vector<8x128xf32>
    tpu.vector_store %arg8[%c0_19, %c0_20], %28 {strides = array<i32>} : memref<8x128xf32, #tpu.memory_space<vmem>>, vector<8x128xf32>,
    return
  }
  func.func @transform_0(%arg0: i32) -> (i32, i32) {
    %c0_i32 = arith.constant 0 : i32
    %c0_i32_0 = arith.constant 0 : i32
    return %arg0, %c0_i32 : i32, i32
  }
  func.func @transform_1(%arg0: i32) -> (i32, i32) {
    %c0_i32 = arith.constant 0 : i32
    %c0_i32_0 = arith.constant 0 : i32
    %c0_i32_1 = arith.constant 0 : i32
    return %c0_i32, %c0_i32_0 : i32, i32
  }
  func.func @transform_2(%arg0: i32) -> (i32, i32) {
    %c0_i32 = arith.constant 0 : i32
    %c0_i32_0 = arith.constant 0 : i32
    %c0_i32_1 = arith.constant 0 : i32
    return %c0_i32, %c0_i32_0 : i32, i32
  }
  func.func @transform_3(%arg0: i32) -> (i32, i32) {
    %c0_i32 = arith.constant 0 : i32
    %c0_i32_0 = arith.constant 0 : i32
    %c0_i32_1 = arith.constant 0 : i32
    return %c0_i32, %c0_i32_0 : i32, i32
  }
  func.func @transform_4(%arg0: i32) -> (i32, i32) {
    %c0_i32 = arith.constant 0 : i32
    %c0_i32_0 = arith.constant 0 : i32
    %c0_i32_1 = arith.constant 0 : i32
    return %c0_i32, %c0_i32_0 : i32, i32
  }
  func.func @transform_5(%arg0: i32) -> (i32, i32) {
    %c0_i32 = arith.constant 0 : i32
    %c0_i32_0 = arith.constant 0 : i32
    %c0_i32_1 = arith.constant 0 : i32
    return %c0_i32, %c0_i32_0 : i32, i32
  }
  func.func @transform_6(%arg0: i32) -> (i32, i32) {
    %c0_i32 = arith.constant 0 : i32
    %c0_i32_0 = arith.constant 0 : i32
    %c0_i32_1 = arith.constant 0 : i32
    return %c0_i32, %c0_i32_0 : i32, i32
  }
  func.func @transform_7(%arg0: i32) -> (i32, i32) {
    %c0_i32 = arith.constant 0 : i32
    %c0_i32_0 = arith.constant 0 : i32
    return %arg0, %c0_i32 : i32, i32
  }
}

</mosaic_0001>

<bundles_post_ra>
// kernel: tpu_custom_call.1
= control target key start
LH: loop header
LB: loop body
LE: loop exit
PB: predicated region body
PF: predicated region fallthrough
CT: control target
= control target key end

     0   :  { %12 = vsyncpa [#allocation3], 0  ;;  %s1034_s0 = inlined_call_operand.hbm [shape: f32[8,16], index: 0, kind: input, shape index: {}]   ;;  %s1035_s1 = inlined_call_operand.hbm [shape: f32[16,400], index: 1, kind: input, shape index: {}]   ;;  %s1036_s2 = inlined_call_operand.vmem [shape: f32[1,400], index: 2, kind: input, shape index: {}]   ;;  %s1037_s3 = inlined_call_operand.hbm [shape: f32[400,100], index: 3, kind: input, shape index: {}]   ;;  %s1038_s4 = inlined_call_operand.vmem [shape: f32[1,100], index: 4, kind: input, shape index: {}]   ;;  %s1039_s5 = inlined_call_operand.hbm [shape: f32[100,128], index: 5, kind: input, shape index: {}]   ;;  %s1040_s6 = inlined_call_operand.vmem [shape: f32[1,128], index: 6, kind: input, shape index: {}]   ;;  %s1041_s7 = inlined_call_operand.hbm [shape: f32[8,128], index: 7, kind: output, shape index: {}]  }
   0x1   :  { %13 = vsyncpa [#allocation6], 0 }
   0x2   :  { %14 = vsyncpa [#allocation9], 0 }
   0x3   :  { %15 = vsyncpa [#allocation4], 0  ;;  %s891_s24 = smov [#allocation5]   ;;  %s773_s28 = scalar_lea.hbm %s1035_s1, 1024 }
   0x4   :  { %s31_s25 = sshll.u32 %s891_s24, 4  ;;  %p774_p0 = scmp.ne.s32.totalorder %s1035_s1, %s773_s28  ;;  %s32_s25 = int_to_ptr.vmem [resolvable:$true] %s31_s25 }
   0x5   :  { %p777_p1 = scmp.lt.u32.totalorder %s773_s28, %s1035_s1 }
   0x7   :  { %p779_p2 = pnand %p777_p1, %p774_p0 }
   0x9   :  { %782 = shalt.err (!%p779_p2)
}
   0xa   :  { %s783_s10 = scalar_lea.vmem %s32_s25, 1024  ;;  %p788_p4 = scmp.lt.s32.totalorder %s32_s25, %s32_s25 }
   0xb   :  { %p784_p3 = scmp.ne.s32.totalorder %s32_s25, %s783_s10  ;;  %p789_p5 = scmp.lt.s32.totalorder %s783_s10, %s783_s10 }
   0xd   :  { %p790_p6 = por %p789_p5, %p788_p4 }
   0xf   :  { %p791_p7 = pnand %p790_p6, %p784_p3 }
  0x11   :  { %794 = shalt.err (!%p791_p7)
}
  0x12   :  { %s892_s11 = smov 512   ;;  %s893_s12 = smov 32  }
  0x13   :  { %37 = dma.hbm_to_vmem [thread:$0]  %s1035_s1, 1024, %s32_s25, [#allocation6], %s892_s11, %s892_s11, %s893_s12  }
  0x14   :  { %s894_s15 = smov [#allocation2]   ;;  %s895_s17 = smov [#allocation7]  }
  0x15   :  { %s22_s16 = sshll.u32 %s894_s15, 4  ;;  %s45_s18 = sshll.u32 %s895_s17, 4  ;;  %s23_s16 = int_to_ptr.vmem [resolvable:$true] %s22_s16  ;;  %s46_s18 = int_to_ptr.vmem [resolvable:$true] %s45_s18 }
  0x16   :  { %s795_s21 = scalar_lea.hbm %s1034_s0, 128 }
  0x17   :  { %p796_p8 = scmp.ne.s32.totalorder %s1034_s0, %s795_s21  ;;  %p799_p9 = scmp.lt.u32.totalorder %s795_s21, %s1034_s0 }
  0x19   :  { %p801_p10 = pnand %p799_p9, %p796_p8 }
  0x1b   :  { %804 = shalt.err (!%p801_p10)
}
  0x1c   :  { %s805_s1 = scalar_lea.vmem %s23_s16, 128  ;;  %p810_p12 = scmp.lt.s32.totalorder %s23_s16, %s23_s16 }
  0x1d   :  { %p806_p11 = scmp.ne.s32.totalorder %s23_s16, %s805_s1  ;;  %p811_p13 = scmp.lt.s32.totalorder %s805_s1, %s805_s1 }
  0x1f   :  { %p812_p0 = por %p811_p13, %p810_p12 }
  0x21   :  { %p813_p1 = pnand %p812_p0, %p806_p11 }
  0x23   :  { %816 = shalt.err (!%p813_p1)
}
  0x24   :  { %25 = dma.hbm_to_vmem [thread:$0]  %s1034_s0, 128, %s23_s16, [#allocation3]  }
  0x25   :  { %s817_s30 = scalar_lea.hbm %s1037_s3, 6400 }
  0x26   :  { %p818_p2 = scmp.ne.s32.totalorder %s1037_s3, %s817_s30  ;;  %p821_p3 = scmp.lt.u32.totalorder %s817_s30, %s1037_s3 }
  0x28   :  { %p823_p4 = pnand %p821_p3, %p818_p2 }
  0x2a   :  { %826 = shalt.err (!%p823_p4)
}
  0x2b   :  { %s827_s12 = scalar_lea.vmem %s46_s18, 6400  ;;  %p832_p6 = scmp.lt.s32.totalorder %s46_s18, %s46_s18 }
  0x2c   :  { %p828_p5 = scmp.ne.s32.totalorder %s46_s18, %s827_s12  ;;  %p833_p7 = scmp.lt.s32.totalorder %s827_s12, %s827_s12 }
  0x2e   :  { %p834_p8 = por %p833_p7, %p832_p6 }
  0x30   :  { %p835_p9 = pnand %p834_p8, %p828_p5 }
  0x32   :  { %838 = shalt.err (!%p835_p9)
}
  0x33   :  { %s896_s0 = smov 128   ;;  %s897_s13 = smov 8  }
  0x34   :  { %51 = dma.hbm_to_vmem [thread:$0]  %s1037_s3, 6400, %s46_s18, [#allocation6], %s896_s0, %s896_s0, %s897_s13  }
  0x35   :  { %s898_s16 = smov [#allocation8]   ;;  %s839_s21 = scalar_lea.hbm %s1039_s5, 1664 }
  0x36   :  { %s59_s17 = sshll.u32 %s898_s16, 4  ;;  %p840_p10 = scmp.ne.s32.totalorder %s1039_s5, %s839_s21  ;;  %s60_s17 = int_to_ptr.vmem [resolvable:$true] %s59_s17 }
  0x37   :  { %p843_p11 = scmp.lt.u32.totalorder %s839_s21, %s1039_s5 }
  0x39   :  { %p845_p12 = pnand %p843_p11, %p840_p10 }
  0x3b   :  { %848 = shalt.err (!%p845_p12)
}
  0x3c   :  { %s849_s1 = scalar_lea.vmem %s60_s17, 1664  ;;  %p854_p0 = scmp.lt.s32.totalorder %s60_s17, %s60_s17 }
  0x3d   :  { %p850_p13 = scmp.ne.s32.totalorder %s60_s17, %s849_s1  ;;  %p855_p1 = scmp.lt.s32.totalorder %s849_s1, %s849_s1 }
  0x3f   :  { %p856_p2 = por %p855_p1, %p854_p0 }
  0x41   :  { %p857_p3 = pnand %p856_p2, %p850_p13 }
  0x43   :  { %860 = shalt.err (!%p857_p3)
}
  0x44   :  { %65 = dma.hbm_to_vmem [thread:$0]  %s1039_s5, 1664, %s60_s17, [#allocation9], %s896_s0, %s896_s0, %s897_s13  }
  0x45   :  { %883 = dma.done.wait [#allocation3], 128  }
  0x46   :  { %884 = vsyncadd [#allocation3], 4294967168 }
  0x47   :  { %885 = dma.done.wait [#allocation6], 7424  }
  0x48   :  { %886 = vsyncadd [#allocation6], 4294959872 }
  0x49   :  { %887 = dma.done.wait [#allocation9], 1664  }
  0x4a   :  { %888 = vsyncadd [#allocation9], 4294965632  ;;  %v899_v0 = vmov 0.0   ;;  %v82_v1 = vld [vmem:[#allocation5 + $0x8] sm:$0xff]  ;;  %v81_v3 = vld [vmem:[#allocation5] sm:$0xff]  ;;  %vm111_vm0 = vcmask 130048  }
  0x4b   :  { %179 = vmatprep.mubr.f32.mxu1 %v899_v0  ;;  %v86_v2 = vld [vmem:[#allocation5 + $0x28] sm:$0xff]  ;;  %v85_v5 = vld [vmem:[#allocation5 + $0x20] sm:$0xff]  ;;  %v84_v6 = vld [vmem:[#allocation5 + $0x18] sm:$0xff]  ;;  %v900_v35 = vmov 0.0|0.0   ;;  %vm486_vm1 = vcmask 1043456   ;;  %vm901_vm2 = vmmov 0  }
  0x4c   :  { %v672_v4 = vpack.c.bf16 %v86_v2, %v82_v1  ;;  %v674_v7 = vpack.c.bf16 %v85_v5, %v81_v3  ;;  %v80_v8 = vld [vmem:[#allocation2] sm:$0xff]  ;;  %v83_v10 = vld [vmem:[#allocation5 + $0x10] sm:$0xff]  ;;  %v277_v13 = vld [vmem:[#allocation7 + $0x80] sm:$0xff]  ;;  %vm482_vm3 = vcmask 818176  }
  0x4d   :  { %v88_v9 = vld [vmem:[#allocation5 + $0x38] sm:$0xff]  ;;  %v87_v11 = vld [vmem:[#allocation5 + $0x30] sm:$0xff]  ;;  %v278_v14 = vld [vmem:[#allocation7 + $0x88] sm:$0xff] }
  0x4e   :  { %673 = vmatprep.subr.bf16.mxu1 %v672_v4  ;;  %v676_v12 = vpack.c.bf16 %v88_v9, %v84_v6  ;;  %v261_v15 = vld [vmem:[#allocation7] sm:$0xff]  ;;  %v678_v16 = vpack.c.bf16 %v87_v11, %v83_v10  ;;  %v680_v17 = vpack.c.bf16 %v278_v14, %v277_v13  ;;  %v262_v18 = vld [vmem:[#allocation7 + $0x8] sm:$0xff]  ;;  %v279_v22 = vld [vmem:[#allocation7 + $0x90] sm:$0xff] }
  0x4f   :  { %675 = vmatpush1.bf16.msra.mxu1 %v674_v7  ;;  %v293_v19 = vld [vmem:[#allocation7 + $0x100] sm:$0xff]  ;;  %v294_v20 = vld [vmem:[#allocation7 + $0x108] sm:$0xff]  ;;  %v682_v21 = vpack.c.bf16 %v262_v18, %v261_v15  ;;  %v280_v23 = vld [vmem:[#allocation7 + $0x98] sm:$0xff] }
  0x50   :  { %677 = vmatprep.subr.bf16.mxu1 %v676_v12  ;;  %v263_v24 = vld [vmem:[#allocation7 + $0x10] sm:$0xff]  ;;  %681 = vmatprep.subr.bf16.mxu0 %v680_v17  ;;  %v684_v25 = vpack.c.bf16 %v280_v23, %v279_v22  ;;  %v264_v26 = vld [vmem:[#allocation7 + $0x18] sm:$0xff]  ;;  %v281_v28 = vld [vmem:[#allocation7 + $0xa0] sm:$0xff]  ;;  %v713_v30 = vpack.c.bf16 %v294_v20, %v293_v19 }
  0x51   :  { %683 = vmatpush3.bf16.msra.mxu0 %v682_v21  ;;  %v686_v27 = vpack.c.bf16 %v264_v26, %v263_v24  ;;  %v282_v29 = vld [vmem:[#allocation7 + $0xa8] sm:$0xff]  ;;  %v295_v31 = vld [vmem:[#allocation7 + $0x110] sm:$0xff]  ;;  %v265_v33 = vld [vmem:[#allocation7 + $0x20] sm:$0xff] }
  0x52   :  { %587 = vmatmul.mubr.msk.f32.vlgmr.msra.gmra.mrb[0].mxu1 %vm111_vm0, %v80_v8  ;;  %v688_v32 = vpack.c.bf16 %v282_v29, %v281_v28  ;;  %v266_v34 = vld [vmem:[#allocation7 + $0x28] sm:$0xff]  ;;  %685 = vmatprep.subr.bf16.mxu0 %v684_v25  ;;  %v296_v36 = vld [vmem:[#allocation7 + $0x118] sm:$0xff]  ;;  %v283_v37 = vld [vmem:[#allocation7 + $0xb0] sm:$0xff] }
  0x53   :  { %679 = vmatpush1.bf16.msra.mxu1 %v678_v16  ;;  %250 = vmatprep.mubr.f32.mxu1 %v899_v0  ;;  %v284_v38 = vld [vmem:[#allocation7 + $0xb8] sm:$0xff]  ;;  %v690_v39 = vpack.c.bf16 %v266_v34, %v265_v33  ;;  %v716_v40 = vpack.c.bf16 %v296_v36, %v295_v31  ;;  %v297_v41 = vld [vmem:[#allocation7 + $0x120] sm:$0xff]  ;;  %v267_v43 = vld [vmem:[#allocation7 + $0x30] sm:$0xff] }
  0x54   :  { %712 = vmatprep.subr.bf16.mxu1 %v900_v35  ;;  %v692_v42 = vpack.c.bf16 %v284_v38, %v283_v37  ;;  %v268_v44 = vld [vmem:[#allocation7 + $0x38] sm:$0xff]  ;;  %v298_v45 = vld [vmem:[#allocation7 + $0x128] sm:$0xff]  ;;  %v285_v46 = vld [vmem:[#allocation7 + $0xc0] sm:$0xff] }
  0x55   :  { %687 = vmatpush3.bf16.msra.mxu0 %v686_v27  ;;  %v286_v47 = vld [vmem:[#allocation7 + $0xc8] sm:$0xff]  ;;  %v694_v48 = vpack.c.bf16 %v268_v44, %v267_v43  ;;  %v719_v49 = vpack.c.bf16 %v298_v45, %v297_v41  ;;  %v299_v50 = vld [vmem:[#allocation7 + $0x130] sm:$0xff]  ;;  %v269_v52 = vld [vmem:[#allocation7 + $0x40] sm:$0xff]  ;;  %v91_v27 = vlaneseq }
  0x56   :  { %588 = vmatmul.mubr.msk.f32.vlgmr.msra.gmra.mrb[2].mxu1 %vm111_vm0, %v80_v8  ;;  %689 = vmatprep.subr.bf16.mxu0 %v688_v32  ;;  %v696_v51 = vpack.c.bf16 %v286_v47, %v285_v46  ;;  %v270_v53 = vld [vmem:[#allocation7 + $0x48] sm:$0xff]  ;;  %v300_v54 = vld [vmem:[#allocation7 + $0x138] sm:$0xff]  ;;  %v287_v55 = vld [vmem:[#allocation7 + $0xd0] sm:$0xff] }
  0x57   :  { %714 = vmatpush1.bf16.msra.mxu1 %v713_v30  ;;  %v288_v56 = vld [vmem:[#allocation7 + $0xd8] sm:$0xff]  ;;  %v698_v57 = vpack.c.bf16 %v270_v53, %v269_v52  ;;  %v722_v58 = vpack.c.bf16 %v300_v54, %v299_v50  ;;  %v301_v59 = vld [vmem:[#allocation7 + $0x140] sm:$0xff]  ;;  %v271_v61 = vld [vmem:[#allocation7 + $0x50] sm:$0xff]  ;;  %v92_v28 = vshrl.u32 %v91_v27, 7 }
  0x58   :  { %715 = vmatprep.subr.bf16.mxu1 %v900_v35  ;;  %v700_v60 = vpack.c.bf16 %v288_v56, %v287_v55  ;;  %v272_v62 = vld [vmem:[#allocation7 + $0x58] sm:$0xff]  ;;  %v302_v63 = vld [vmem:[#allocation7 + $0x148] sm:$0xff]  ;;  %v289_v1 = vld [vmem:[#allocation7 + $0xe0] sm:$0xff] }
  0x59   :  { %691 = vmatpush3.bf16.msra.mxu0 %v690_v39  ;;  %v290_v2 = vld [vmem:[#allocation7 + $0xe8] sm:$0xff]  ;;  %v702_v3 = vpack.c.bf16 %v272_v62, %v271_v61  ;;  %v725_v4 = vpack.c.bf16 %v302_v63, %v301_v59  ;;  %v303_v6 = vld [vmem:[#allocation7 + $0x150] sm:$0xff]  ;;  %v304_v7 = vld [vmem:[#allocation7 + $0x158] sm:$0xff]  ;;  %v93_v29 = vsub.s32 0, %v92_v28  ;;  %v97_v31 = vsub.s32 1, %v92_v28 }
  0x5a   :  { %693 = vmatprep.subr.bf16.mxu0 %v692_v42  ;;  %v704_v5 = vpack.c.bf16 %v290_v2, %v289_v1  ;;  %v728_v8 = vpack.c.bf16 %v304_v7, %v303_v6  ;;  %v273_v9 = vld [vmem:[#allocation7 + $0x60] sm:$0xff]  ;;  %v274_v10 = vld [vmem:[#allocation7 + $0x68] sm:$0xff]  ;;  %v291_v15 = vld [vmem:[#allocation7 + $0xf0] sm:$0xff]  ;;  %v101_v33 = vsub.s32 2, %v92_v28  ;;  %v105_v34 = vsub.s32 3, %v92_v28 }
  0x5b   :  { %717 = vmatpush1.bf16.msra.mxu1 %v716_v40  ;;  %v305_v11 = vld [vmem:[#allocation7 + $0x160] sm:$0xff]  ;;  %v706_v12 = vpack.c.bf16 %v274_v10, %v273_v9  ;;  %v306_v13 = vld [vmem:[#allocation7 + $0x168] sm:$0xff]  ;;  %v292_v16 = vld [vmem:[#allocation7 + $0xf8] sm:$0xff] }
  0x5c   :  { %718 = vmatprep.subr.bf16.mxu1 %v900_v35  ;;  %v731_v14 = vpack.c.bf16 %v306_v13, %v305_v11  ;;  %v708_v17 = vpack.c.bf16 %v292_v16, %v291_v15  ;;  %v275_v18 = vld [vmem:[#allocation7 + $0x70] sm:$0xff]  ;;  %v276_v19 = vld [vmem:[#allocation7 + $0x78] sm:$0xff]  ;;  %v309_v24 = vld [vmem:[#allocation7 + $0x180] sm:$0xff] }
  0x5d   :  { %695 = vmatpush3.bf16.msra.mxu0 %v694_v48  ;;  %v307_v20 = vld [vmem:[#allocation7 + $0x170] sm:$0xff]  ;;  %v710_v21 = vpack.c.bf16 %v276_v19, %v275_v18  ;;  %v308_v22 = vld [vmem:[#allocation7 + $0x178] sm:$0xff]  ;;  %v310_v25 = vld [vmem:[#allocation7 + $0x188] sm:$0xff] }
  0x5e   :  { %697 = vmatprep.subr.bf16.mxu0 %v696_v51  ;;  %v734_v23 = vpack.c.bf16 %v308_v22, %v307_v20  ;;  %v737_v26 = vpack.c.bf16 %v310_v25, %v309_v24  ;;  %v89_v30 = vld [vmem:[%s1036_s2] sm:$0xf]  ;;  %v462_v41 = vld [vmem:[#allocation8] sm:$0xff]  ;;  %v464_v51 = vld [vmem:[#allocation8 + $0x10] sm:$0xff] }
  0x5f   :  { %720 = vmatpush1.bf16.msra.mxu1 %v719_v49  ;;  %v94_v32 = vrot.slane %v89_v30, %v93_v29  ;;  %v98_v36 = vrot.slane %v89_v30, %v97_v31  ;;  %v102_v40 = vrot.slane %v89_v30, %v101_v33  ;;  %v463_v42 = vld [vmem:[#allocation8 + $0x8] sm:$0xff]  ;;  %v106_v43 = vrot.slane %v89_v30, %v105_v34  ;;  %v465_v52 = vld [vmem:[#allocation8 + $0x18] sm:$0xff]  ;;  %v470_v63 = vld [vmem:[#allocation8 + $0x40] sm:$0xff] }
  0x60   :  { %721 = vmatprep.subr.bf16.mxu1 %v900_v35  ;;  %v740_v47 = vpack.c.bf16 %v463_v42, %v462_v41  ;;  %v743_v56 = vpack.c.bf16 %v465_v52, %v464_v51  ;;  %v469_v61 = vld [vmem:[#allocation8 + $0x38] sm:$0xff]  ;;  %v471_v1 = vld [vmem:[#allocation8 + $0x48] sm:$0xff]  ;;  %v474_v6 = vld [vmem:[#allocation8 + $0x60] sm:$0xf] }
  0x61   :  { %699 = vmatpush3.bf16.msra.mxu0 %v698_v57  ;;  %v466_v57 = vld [vmem:[#allocation8 + $0x20] sm:$0xff]  ;;  %v752_v2 = vpack.c.bf16 %v471_v1, %v470_v63  ;;  %v589_v9 = vld [vmem:[%s1038_s4] ss:$0 sm:$0xff]  ;;  %s902_s4 = smov [#allocation10]  }
  0x62   :  { %701 = vmatprep.subr.bf16.mxu0 %v700_v60  ;;  %v468_v60 = vld [vmem:[#allocation8 + $0x30] sm:$0xff]  ;;  %v591_v15 = vld [vmem:[%s1040_s6] ss:$0 sm:$0xff]  ;;  %s576_s30 = sshll.u32 %s902_s4, 4  ;;  %s577_s30 = int_to_ptr.vmem [resolvable:$true] %s576_s30 }
  0x63   :  { %723 = vmatpush1.bf16.msra.mxu1 %v722_v58  ;;  %v467_v58 = vld [vmem:[#allocation8 + $0x28] sm:$0xff]  ;;  %v749_v62 = vpack.c.bf16 %v469_v61, %v468_v60  ;;  %s861_s8 = scalar_lea.vmem %s577_s30, 128  ;;  %p866_p5 = scmp.lt.s32.totalorder %s577_s30, %s577_s30 }
  0x64   :  { %724 = vmatprep.subr.bf16.mxu1 %v900_v35  ;;  %v746_v59 = vpack.c.bf16 %v467_v58, %v466_v57  ;;  %p862_p4 = scmp.ne.s32.totalorder %s577_s30, %s861_s8  ;;  %p867_p6 = scmp.lt.s32.totalorder %s861_s8, %s861_s8 }
  0x65   :  { %703 = vmatpush3.bf16.msra.mxu0 %v702_v3  ;;  %v472_v3 = vld [vmem:[#allocation8 + $0x50] sm:$0xff] }
  0x66   :  { %705 = vmatprep.subr.bf16.mxu0 %v704_v5  ;;  %p868_p7 = por %p867_p6, %p866_p5 }
  0x67   :  { %726 = vmatpush1.bf16.msra.mxu1 %v725_v4  ;;  %v473_v4 = vld [vmem:[#allocation8 + $0x58] sm:$0xff] }
  0x68   :  { %727 = vmatprep.subr.bf16.mxu1 %v900_v35  ;;  %v755_v5 = vpack.c.bf16 %v473_v4, %v472_v3  ;;  %p869_p8 = pnand %p868_p7, %p862_p4 }
  0x69   :  { %707 = vmatpush3.bf16.msra.mxu0 %v706_v12 }
  0x6a   :  { %709 = vmatprep.subr.bf16.mxu0 %v708_v17 }
  0x6b   :  { %729 = vmatpush1.bf16.msra.mxu1 %v728_v8 }
  0x6c   :  { %730 = vmatprep.subr.bf16.mxu1 %v900_v35 }
  0x6d   :  { %711 = vmatpush3.bf16.msra.mxu0 %v710_v21 }
  0x6e   :  { %739 = vmatprep.subr.bf16.mxu0 %v900_v35 }
  0x6f   :  { %732 = vmatpush1.bf16.msra.mxu1 %v731_v14 }
  0x70   :  { %733 = vmatprep.subr.bf16.mxu1 %v900_v35 }
  0x73   :  { %735 = vmatpush1.bf16.msra.mxu1 %v734_v23 }
  0x74   :  { %736 = vmatprep.subr.bf16.mxu1 %v900_v35 }
  0x77   :  { %738 = vmatpush1.bf16.msra.mxu1 %v737_v26 }
 0x125   :  { %v181_v37 = vpop.f32.mrb[0].mxu1 }
 0x126   :  { %v182_v38 = vadd.f32 %v181_v37, %v94_v32  ;;  %v183_v39 = vpop.f32.mrb[1].mxu1 }
 0x127   :  { %v184_v44 = vadd.f32 %v183_v39, %v98_v36 }
 0x128   :  { %v257_v48 = vmax.f32 %v182_v38, 0.0 }
 0x129   :  { %v252_v45 = vpop.f32.mrb[2].mxu1  ;;  %v258_v46 = vmax.f32 %v184_v44, 0.0 }
 0x12a   :  { %v253_v49 = vadd.f32 %v252_v45, %v102_v40  ;;  %v254_v50 = vpop.f32.mrb[3].mxu1 }
 0x12b   :  { %v255_v53 = vadd.f32 %v254_v50, %v106_v43  ;;  %385 = vmatprep.mubr.f32.mxu0 %v258_v46 }
 0x12c   :  { %v259_v54 = vmax.f32 %v253_v49, 0.0  ;;  %386 = vmatmul.mubr.f32.vlgmr.msra.gmra.mrb[0].mxu0 %v257_v48 }
 0x12d   :  { %v260_v55 = vmax.f32 %v255_v53, 0.0  ;;  %741 = vmatpush3.bf16.msra.mxu0 %v740_v47  ;;  %669 = vmatprep.mubr.msk.f32.mxu0 %vm901_vm2, %v899_v0 }
 0x12e   :  { %742 = vmatprep.subr.bf16.mxu0 %v900_v35 }
 0x12f   :  { %590 = vmatprep.mubr.msk.f32.mxu1 %vm111_vm0, %v260_v55 }
 0x130   :  { %456 = vmatmul.mubr.f32.vlgmr.msra.gmra.mrb[4].mxu1 %v259_v54 }
 0x131   :  { %744 = vmatpush3.bf16.msra.mxu0 %v743_v56 }
 0x132   :  { %745 = vmatprep.subr.bf16.mxu0 %v900_v35 }
 0x135   :  { %747 = vmatpush3.bf16.msra.mxu0 %v746_v59 }
 0x136   :  { %748 = vmatprep.subr.bf16.mxu0 %v900_v35 }
 0x139   :  { %750 = vmatpush3.bf16.msra.mxu0 %v749_v62 }
 0x13a   :  { %751 = vmatprep.subr.bf16.mxu0 %v900_v35 }
 0x13d   :  { %753 = vmatpush3.bf16.msra.mxu0 %v752_v2 }
 0x13e   :  { %754 = vmatprep.subr.bf16.mxu0 %v900_v35 }
 0x141   :  { %756 = vmatpush3.bf16.msra.mxu0 %v755_v5 }
 0x142   :  { %667 = vmatprep.subr.mxu0 %v899_v0 }
 0x145   :  { %668 = vmatpush3.msk.msra.mxu0 %vm486_vm1, %v474_v6 }
 0x1ff   :  { %v626_v7 = vpop.f32.mrb[0].mxu0 }
 0x200   :  { %v627_v8 = vpop.f32.mrb[1].mxu0 }
 0x201   :  { %v628_v10 = vadd.f32 %v627_v8, %v626_v7 }
 0x203   :  { %v388_v35 = vadd.f32 %v628_v10, %v589_v9  ;;  %v457_v11 = vpop.f32.mrb[4].mxu1 }
 0x204   :  { %v459_v12 = vpop.f32.mrb[5].mxu1 }
 0x205   :  { %v458_v13 = vadd.f32 %v457_v11, %v388_v35 }
 0x207   :  { %v461_v14 = vmax.f32 %v458_v13, 0.0 }
 0x209   :  { %670 = vmatmul.mubr.msk.f32.vlgmr.msra.gmra.mrb[2].mxu0 %vm482_vm3, %v461_v14 }
 0x2dc   :  { %v556_v16 = vpop.f32.mrb[2].mxu0 }
 0x2dd   :  { %v557_v0 = vadd.f32 %v591_v15, %v556_v16  ;;  %v671_v17 = vpop.f32.mrb[3].mxu0 }
 0x2df   :  { %560 = vmax.xlane.f32.xlu0 %v557_v0 }
 0x36c   :  { %v561_v18 = vpop.xlane.xlu0 %560 }
 0x36d   :  { %v562_v19 = vsub.f32 %v557_v0, %v561_v18 }
 0x36f   :  { %v563_v20 = vmul.f32 1.442695, %v562_v19 }
 0x371   :  { %769 = vpow2.f32 %v563_v20 }
 0x37b   :  { %v770_v21 = vpop.eup %769 }
 0x37c   :  { %565 = vadd.xlane.f32.xlu0 %v770_v21 }
 0x409   :  { %v566_v22 = vpop.xlane.xlu0 %565 }
 0x40a   :  { %771 = vrcp.f32 %v566_v22 }
 0x414   :  { %v772_v23 = vpop.eup %771 }
 0x415   :  { %v568_v24 = vmul.f32 %v772_v23, %v770_v21 }
 0x417   :  { %569 = vst [vmem:[#allocation10] sm:$0xff] %v568_v24 }
 0x418   :  { %872 = shalt.err (!%p869_p8)
}
 0x419   :  { %s873_s10 = scalar_lea.hbm %s1041_s7, 128 }
 0x41a   :  { %p874_p9 = scmp.ne.s32.totalorder %s1041_s7, %s873_s10  ;;  %p877_p10 = scmp.lt.u32.totalorder %s873_s10, %s1041_s7 }
 0x41c   :  { %p879_p11 = pnand %p877_p10, %p874_p9 }
 0x41e   :  { %882 = shalt.err (!%p879_p11)
}
 0x41f   :  { %579 = dma.vmem_to_hbm [thread:$0]  %s577_s30, 128, %s1041_s7, [#allocation4]  }
 0x420   :  { %889 = dma.done.wait [#allocation4], 128  }
 0x421   :  { %890 = vsyncadd [#allocation4], 4294967168 }
 0x422   :  { %583 = vsyncpa [#allocation3], 1 }
 0x423   :  { %584 = vsyncpa [#allocation6], 1 }
 0x424   :  { %585 = vsyncpa [#allocation9], 1 }
 0x425   :  { %586 = vsyncpa [#allocation4], 1 }

</bundles_post_ra>
